<compile_context>
chip_gen: v7x
topology: tpu7x:2x2x1
jax: 0.10.0
libtpu: 0.0.40
codegen_flags: <defaults>
</compile_context>

<pallas_src>
import jax
import jax.numpy as jnp
from jax.experimental import pallas as pl
from jax.experimental.pallas import tpu as pltpu

LANE = 128
TB_MAX = 2048  # max batch-tile rows (keeps h1 f32 temp + buffers << 32 MiB VMEM)


def _round_up(n, m):
    return ((n + m - 1) // m) * m


def _cdiv(a, b):
    return (a + b - 1) // b


def mlp_kernel(x_ref, w1_ref, b1_ref, w2_ref, b2_ref, w3_ref, b3_ref, o_ref):
    bf16 = jnp.bfloat16
    # Cast x f32 -> bf16 on the VPU (free under the MXU); avoids a wrapper pass.
    x = x_ref[...].astype(bf16)
    # Layer 1: (TB,128) @ (128,512) -> f32 acc, bias + ReLU in f32.
    h1 = jnp.dot(x, w1_ref[...], preferred_element_type=jnp.float32)
    h1 = jnp.maximum(h1 + b1_ref[...], 0.0)
    # Layer 2: (TB,512) @ (512,128pad) -> f32 acc, bias + ReLU (lane-dense h2).
    h2 = jnp.dot(h1.astype(bf16), w2_ref[...], preferred_element_type=jnp.float32)
    h2 = jnp.maximum(h2 + b2_ref[...], 0.0)
    # Layer 3: (TB,128pad) @ (128pad,out_dim) -> narrow logits.
    out = jnp.dot(h2.astype(bf16), w3_ref[...], preferred_element_type=jnp.float32)
    o_ref[...] = (out + b3_ref[...]).astype(o_ref.dtype)


def speech_feature_classifier(x, params, *, tb_max=TB_MAX):
    """Fused forward pass of SpeechFeatureClassifier.

    x: (B, input_dim) float32
    params: dict with f32 weights stored transposed as (in_dim, out_dim):
            w1 (in,512), b1 (1,512), w2 (512,64), b2 (1,64),
            w3 (64,out), b3 (1,out).
    Returns (B, out_dim) float32 logits.
    """
    B, in_dim = x.shape
    h1_dim = params["w1"].shape[1]                       # 512
    h2_dim = params["w2"].shape[1]                       # 64
    out_dim = params["w3"].shape[1]                      # 2

    # Lane-pad only the intermediate hidden dim (64 -> 128) so h2 / layer-2 and
    # layer-3 contractions stay lane-dense.  The final N stays at out_dim.
    h2_pad = _round_up(h2_dim, LANE)                     # 64 -> 128

    # Batch tiling: one tile if B fits in tb_max rows; otherwise split into an
    # even number of tiles (v7x 2-TC balance), each a multiple of 8 sublanes.
    # The last grid step may be ragged; Pallas masks its OOB reads/writes.
    # TODO(synk): for tiny single-tile batches a plain XLA fusion may be
    # cheaper than the pallas_call launch; kept on the kernel path here.
    bp8 = _round_up(B, 8)
    if bp8 <= tb_max:
        tb = bp8
    else:
        num_tiles = _cdiv(bp8, tb_max)
        if num_tiles % 2:
            num_tiles += 1
        tb = _round_up(_cdiv(bp8, num_tiles), 8)
    grid = _cdiv(B, tb)

    bf16 = jnp.bfloat16
    f32 = jnp.float32
    w1 = params["w1"].astype(bf16)
    b1 = params["b1"].astype(f32)
    w2 = jnp.pad(params["w2"], ((0, 0), (0, h2_pad - h2_dim))).astype(bf16)
    b2 = jnp.pad(params["b2"], ((0, 0), (0, h2_pad - h2_dim))).astype(f32)
    w3 = jnp.pad(params["w3"], ((0, h2_pad - h2_dim), (0, 0))).astype(bf16)
    b3 = params["b3"].astype(f32)

    # Weights/biases stay VMEM-resident across the whole grid (constant maps).
    const = lambda a: pl.BlockSpec(a.shape, lambda i: (0,) * a.ndim)

    flops = 2 * B * (in_dim * h1_dim + h1_dim * h2_dim + h2_dim * out_dim)
    bytes_accessed = (
        x.size * 4 + B * out_dim * 4
        + (w1.size + w2.size + w3.size) * 2
        + (b1.size + b2.size + b3.size) * 4
    )

    out = pl.pallas_call(
        mlp_kernel,
        out_shape=jax.ShapeDtypeStruct((B, out_dim), jnp.float32),
        grid=(grid,),
        in_specs=[
            pl.BlockSpec((tb, in_dim), lambda i: (i, 0)),   # x streamed per tile
            const(w1), const(b1),
            const(w2), const(b2),
            const(w3), const(b3),
        ],
        out_specs=pl.BlockSpec((tb, out_dim), lambda i: (i, 0)),
        compiler_params=pltpu.CompilerParams(
            dimension_semantics=("parallel",)),
        cost_estimate=pl.CostEstimate(
            flops=flops, transcendentals=0, bytes_accessed=bytes_accessed),
    )(x, w1, b1, w2, b2, w3, b3)

    return out


def init_params(key, input_dim=128, output_dim=2):
    """Deterministic synthetic parameters (nn.Linear shapes, stored transposed
    as (in_dim, out_dim), f32)."""
    ks = jax.random.split(key, 6)
    scale = 0.02
    return {
        "w1": scale * jax.random.normal(ks[0], (input_dim, 512), jnp.float32),
        "b1": scale * jax.random.normal(ks[1], (1, 512), jnp.float32),
        "w2": scale * jax.random.normal(ks[2], (512, 64), jnp.float32),
        "b2": scale * jax.random.normal(ks[3], (1, 64), jnp.float32),
        "w3": scale * jax.random.normal(ks[4], (64, output_dim), jnp.float32),
        "b3": scale * jax.random.normal(ks[5], (1, output_dim), jnp.float32),
    }


def reference_forward(x, p):
    """Pure-JAX reference with the same bf16-input / f32-accum numerics."""
    bf16 = jnp.bfloat16
    h1 = jnp.dot(x.astype(bf16), p["w1"].astype(bf16),
                 preferred_element_type=jnp.float32) + p["b1"]
    h1 = jnp.maximum(h1, 0.0)
    h2 = jnp.dot(h1.astype(bf16), p["w2"].astype(bf16),
                 preferred_element_type=jnp.float32) + p["b2"]
    h2 = jnp.maximum(h2, 0.0)
    return jnp.dot(h2.astype(bf16), p["w3"].astype(bf16),
                   preferred_element_type=jnp.float32) + p["b3"]


if __name__ == "__main__":
    key = jax.random.PRNGKey(0)
    k_x, k_p = jax.random.split(key)

    B, input_dim, output_dim = 8, 128, 2
    x = jax.random.normal(k_x, (B, input_dim), jnp.float32)
    params = init_params(k_p, input_dim=input_dim, output_dim=output_dim)

    # Small batch: single tile, single grid step.
    logits = speech_feature_classifier(x, params)
    jax.block_until_ready(logits)
    ref = reference_forward(x, params)
    assert logits.shape == (B, output_dim)
    assert jnp.allclose(logits, ref, atol=2e-3, rtol=2e-3)

    # Multi-tile path with an even grid and a ragged last block
    # (tb_max forced small so the test stays tiny but exercises the pipeline).
    B2 = 600
    x2 = jax.random.normal(k_x, (B2, input_dim), jnp.float32)
    logits2 = speech_feature_classifier(x2, params, tb_max=256)
    jax.block_until_ready(logits2)
    ref2 = reference_forward(x2, params)
    assert logits2.shape == (B2, output_dim)
    assert jnp.allclose(logits2, ref2, atol=2e-3, rtol=2e-3)

    # Default (large-tile) path on the same batch: single 600-row tile.
    logits3 = speech_feature_classifier(x2, params)
    jax.block_until_ready(logits3)
    assert jnp.allclose(logits3, ref2, atol=2e-3, rtol=2e-3)

    # predict() equivalent (argmax over class dim) — plain JAX glue.
    preds = jnp.argmax(logits, axis=1)
    jax.block_until_ready(preds)

    print("KERNEL_OK")
</pallas_src>

<mosaic_0001>
module attributes {stable_mosaic.version = 11 : i64} {
  func.func @mlp_kernel(%arg0: i32, %arg1: memref<8x128xf32, #tpu.memory_space<vmem>>, %arg2: memref<128x512xbf16, #tpu.memory_space<vmem>>, %arg3: memref<1x512xf32, #tpu.memory_space<vmem>>, %arg4: memref<512x128xbf16, #tpu.memory_space<vmem>>, %arg5: memref<1x128xf32, #tpu.memory_space<vmem>>, %arg6: memref<128x2xbf16, #tpu.memory_space<vmem>>, %arg7: memref<1x2xf32, #tpu.memory_space<vmem>>, %arg8: memref<8x2xf32, #tpu.memory_space<vmem>>) attributes {dimension_semantics = [#tpu.dimension_semantics<parallel>], iteration_bounds = array<i64: 1>, scalar_prefetch = 0 : i64, scratch_operands = 0 : i64, tpu.core_type = #tpu.core_type<tc>, window_params = [{transform_indices = @transform_0, window_bounds = array<i64: 8, 128>}, {pipeline_mode = #tpu.pipeline_mode<synchronous>, transform_indices = @transform_1, window_bounds = array<i64: 128, 512>}, {pipeline_mode = #tpu.pipeline_mode<synchronous>, transform_indices = @transform_2, window_bounds = array<i64: 1, 512>}, {pipeline_mode = #tpu.pipeline_mode<synchronous>, transform_indices = @transform_3, window_bounds = array<i64: 512, 128>}, {pipeline_mode = #tpu.pipeline_mode<synchronous>, transform_indices = @transform_4, window_bounds = array<i64: 1, 128>}, {pipeline_mode = #tpu.pipeline_mode<synchronous>, transform_indices = @transform_5, window_bounds = array<i64: 128, 2>}, {pipeline_mode = #tpu.pipeline_mode<synchronous>, transform_indices = @transform_6, window_bounds = array<i64: 1, 2>}, {transform_indices = @transform_7, window_bounds = array<i64: 8, 2>}]} {
    %c0 = arith.constant 0 : index
    %c0_0 = arith.constant 0 : index
    %0 = vector.load %arg1[%c0, %c0_0] : memref<8x128xf32, #tpu.memory_space<vmem>>, vector<8x128xf32>
    %1 = arith.truncf %0 : vector<8x128xf32> to vector<8x128xbf16>
    %c0_1 = arith.constant 0 : index
    %c0_2 = arith.constant 0 : index
    %2 = vector.load %arg2[%c0_1, %c0_2] : memref<128x512xbf16, #tpu.memory_space<vmem>>, vector<128x512xbf16>
    %cst = arith.constant dense<0.000000e+00> : vector<8x512xf32>
    %3 = tpu.matmul %1, %2, %cst {dimension_numbers = #tpu.dot_dimension_numbers<[1], [0], [0], [1], [0, 0, 1, 1], [], []>} : vector<8x128xbf16>, vector<128x512xbf16>, vector<8x512xf32> -> vector<8x512xf32>
    %c0_3 = arith.constant 0 : index
    %c0_4 = arith.constant 0 : index
    %4 = vector.load %arg3[%c0_3, %c0_4] : memref<1x512xf32, #tpu.memory_space<vmem>>, vector<1x512xf32>
    %5 = vector.broadcast %4 : vector<1x512xf32> to vector<8x512xf32>
    %6 = arith.addf %3, %5 : vector<8x512xf32>
    %cst_5 = arith.constant 0.000000e+00 : f32
    %7 = vector.broadcast %cst_5 : f32 to vector<8x512xf32>
    %8 = arith.maximumf %6, %7 : vector<8x512xf32>
    %9 = arith.truncf %8 : vector<8x512xf32> to vector<8x512xbf16>
    %c0_6 = arith.constant 0 : index
    %c0_7 = arith.constant 0 : index
    %10 = vector.load %arg4[%c0_6, %c0_7] : memref<512x128xbf16, #tpu.memory_space<vmem>>, vector<512x128xbf16>
    %cst_8 = arith.constant dense<0.000000e+00> : vector<8x128xf32>
    %11 = tpu.matmul %9, %10, %cst_8 {dimension_numbers = #tpu.dot_dimension_numbers<[1], [0], [0], [1], [0, 0, 1, 1], [], []>} : vector<8x512xbf16>, vector<512x128xbf16>, vector<8x128xf32> -> vector<8x128xf32>
    %c0_9 = arith.constant 0 : index
    %c0_10 = arith.constant 0 : index
    %12 = vector.load %arg5[%c0_9, %c0_10] : memref<1x128xf32, #tpu.memory_space<vmem>>, vector<1x128xf32>
    %13 = vector.broadcast %12 : vector<1x128xf32> to vector<8x128xf32>
    %14 = arith.addf %11, %13 : vector<8x128xf32>
    %cst_11 = arith.constant 0.000000e+00 : f32
    %15 = vector.broadcast %cst_11 : f32 to vector<8x128xf32>
    %16 = arith.maximumf %14, %15 : vector<8x128xf32>
    %17 = arith.truncf %16 : vector<8x128xf32> to vector<8x128xbf16>
    %c0_12 = arith.constant 0 : index
    %c0_13 = arith.constant 0 : index
    %18 = vector.load %arg6[%c0_12, %c0_13] : memref<128x2xbf16, #tpu.memory_space<vmem>>, vector<128x2xbf16>
    %cst_14 = arith.constant dense<0.000000e+00> : vector<8x2xf32>
    %19 = tpu.matmul %17, %18, %cst_14 {dimension_numbers = #tpu.dot_dimension_numbers<[1], [0], [0], [1], [0, 0, 1, 1], [], []>} : vector<8x128xbf16>, vector<128x2xbf16>, vector<8x2xf32> -> vector<8x2xf32>
    %c0_15 = arith.constant 0 : index
    %c0_16 = arith.constant 0 : index
    %20 = vector.load %arg7[%c0_15, %c0_16] : memref<1x2xf32, #tpu.memory_space<vmem>>, vector<1x2xf32>
    %21 = vector.broadcast %20 : vector<1x2xf32> to vector<8x2xf32>
    %22 = arith.addf %19, %21 : vector<8x2xf32>
    %c0_17 = arith.constant 0 : index
    %c0_18 = arith.constant 0 : index
    %23 = vector.load %arg8[%c0_17, %c0_18] : memref<8x2xf32, #tpu.memory_space<vmem>>, vector<8x2xf32>
    tpu.vector_store %arg8[%c0_17, %c0_18], %22 {strides = array<i32>} : memref<8x2xf32, #tpu.memory_space<vmem>>, vector<8x2xf32>,
    return
  }
  func.func @transform_0(%arg0: i32) -> (i32, i32) {
    %c0_i32 = arith.constant 0 : i32
    %c0_i32_0 = arith.constant 0 : i32
    return %arg0, %c0_i32 : i32, i32
  }
  func.func @transform_1(%arg0: i32) -> (i32, i32) {
    %c0_i32 = arith.constant 0 : i32
    %c0_i32_0 = arith.constant 0 : i32
    %c0_i32_1 = arith.constant 0 : i32
    return %c0_i32, %c0_i32_0 : i32, i32
  }
  func.func @transform_2(%arg0: i32) -> (i32, i32) {
    %c0_i32 = arith.constant 0 : i32
    %c0_i32_0 = arith.constant 0 : i32
    %c0_i32_1 = arith.constant 0 : i32
    return %c0_i32, %c0_i32_0 : i32, i32
  }
  func.func @transform_3(%arg0: i32) -> (i32, i32) {
    %c0_i32 = arith.constant 0 : i32
    %c0_i32_0 = arith.constant 0 : i32
    %c0_i32_1 = arith.constant 0 : i32
    return %c0_i32, %c0_i32_0 : i32, i32
  }
  func.func @transform_4(%arg0: i32) -> (i32, i32) {
    %c0_i32 = arith.constant 0 : i32
    %c0_i32_0 = arith.constant 0 : i32
    %c0_i32_1 = arith.constant 0 : i32
    return %c0_i32, %c0_i32_0 : i32, i32
  }
  func.func @transform_5(%arg0: i32) -> (i32, i32) {
    %c0_i32 = arith.constant 0 : i32
    %c0_i32_0 = arith.constant 0 : i32
    %c0_i32_1 = arith.constant 0 : i32
    return %c0_i32, %c0_i32_0 : i32, i32
  }
  func.func @transform_6(%arg0: i32) -> (i32, i32) {
    %c0_i32 = arith.constant 0 : i32
    %c0_i32_0 = arith.constant 0 : i32
    %c0_i32_1 = arith.constant 0 : i32
    return %c0_i32, %c0_i32_0 : i32, i32
  }
  func.func @transform_7(%arg0: i32) -> (i32, i32) {
    %c0_i32 = arith.constant 0 : i32
    %c0_i32_0 = arith.constant 0 : i32
    return %arg0, %c0_i32 : i32, i32
  }
}

</mosaic_0001>

<bundles_post_ra>
// kernel: tpu_custom_call.1
= control target key start
LH: loop header
LB: loop body
LE: loop exit
PB: predicated region body
PF: predicated region fallthrough
CT: control target
= control target key end

     0   :  { %12 = vsyncpa [#allocation3], 0  ;;  %s1229_s0 = inlined_call_operand.vmem [shape: f32[8,128], index: 0, kind: input, shape index: {}]   ;;  %s1230_s1 = inlined_call_operand.hbm [shape: bf16[128,512], index: 1, kind: input, shape index: {}]   ;;  %s1231_s2 = inlined_call_operand.vmem [shape: f32[1,512], index: 2, kind: input, shape index: {}]   ;;  %s1232_s3 = inlined_call_operand.hbm [shape: bf16[512,128], index: 3, kind: input, shape index: {}]   ;;  %s1233_s4 = inlined_call_operand.vmem [shape: f32[1,128], index: 4, kind: input, shape index: {}]   ;;  %s1234_s5 = inlined_call_operand.vmem [shape: bf16[128,2], index: 5, kind: input, shape index: {}]   ;;  %s1235_s6 = inlined_call_operand.vmem [shape: f32[1,2], index: 6, kind: input, shape index: {}]   ;;  %s1236_s7 = inlined_call_operand.vmem [shape: f32[8,2], index: 7, kind: output, shape index: {}]  }
   0x1   :  { %13 = vsyncpa [#allocation5], 0  ;;  %s1117_s24 = smov [#allocation2]   ;;  %s1069_s28 = scalar_lea.hbm %s1230_s1, 4096 }
   0x2   :  { %s21_s25 = sshll.u32 %s1117_s24, 4  ;;  %p1070_p0 = scmp.ne.s32.totalorder %s1230_s1, %s1069_s28  ;;  %s22_s25 = int_to_ptr.vmem [resolvable:$true] %s21_s25 }
   0x3   :  { %p1073_p1 = scmp.lt.u32.totalorder %s1069_s28, %s1230_s1 }
   0x5   :  { %p1075_p2 = pnand %p1073_p1, %p1070_p0 }
   0x7   :  { %1078 = shalt.err (!%p1075_p2)
}
   0x8   :  { %s1079_s10 = scalar_lea.vmem %s22_s25, 4096  ;;  %p1084_p4 = scmp.lt.s32.totalorder %s22_s25, %s22_s25 }
   0x9   :  { %p1080_p3 = scmp.ne.s32.totalorder %s22_s25, %s1079_s10  ;;  %p1085_p5 = scmp.lt.s32.totalorder %s1079_s10, %s1079_s10 }
   0xb   :  { %p1086_p6 = por %p1085_p5, %p1084_p4 }
   0xd   :  { %p1087_p7 = pnand %p1086_p6, %p1080_p3 }
   0xf   :  { %1090 = shalt.err (!%p1087_p7)
}
  0x10   :  { %s1118_s11 = smov 256   ;;  %s1119_s12 = smov 16  }
  0x11   :  { %27 = dma.hbm_to_vmem [thread:$0]  %s1230_s1, 4096, %s22_s25, [#allocation3], %s1118_s11, %s1118_s11, %s1119_s12  }
  0x12   :  { %s1120_s15 = smov [#allocation4]   ;;  %s1091_s19 = scalar_lea.hbm %s1232_s3, 4096 }
  0x13   :  { %s35_s16 = sshll.u32 %s1120_s15, 4  ;;  %p1092_p8 = scmp.ne.s32.totalorder %s1232_s3, %s1091_s19  ;;  %s36_s16 = int_to_ptr.vmem [resolvable:$true] %s35_s16 }
  0x14   :  { %p1095_p9 = scmp.lt.u32.totalorder %s1091_s19, %s1232_s3 }
  0x16   :  { %p1097_p10 = pnand %p1095_p9, %p1092_p8 }
  0x18   :  { %1100 = shalt.err (!%p1097_p10)
}
  0x19   :  { %s1101_s24 = scalar_lea.vmem %s36_s16, 4096  ;;  %p1106_p12 = scmp.lt.s32.totalorder %s36_s16, %s36_s16 }
  0x1a   :  { %p1102_p11 = scmp.ne.s32.totalorder %s36_s16, %s1101_s24  ;;  %p1107_p13 = scmp.lt.s32.totalorder %s1101_s24, %s1101_s24 }
  0x1c   :  { %p1108_p0 = por %p1107_p13, %p1106_p12 }
  0x1e   :  { %p1109_p1 = pnand %p1108_p0, %p1102_p11 }
  0x20   :  { %1112 = shalt.err (!%p1109_p1)
}
  0x21   :  { %s1121_s1 = smov 64   ;;  %s1122_s25 = smov 4  }
  0x22   :  { %41 = dma.hbm_to_vmem [thread:$0]  %s1232_s3, 4096, %s36_s16, [#allocation5], %s1121_s1, %s1121_s1, %s1122_s25  }
  0x23   :  { %1113 = dma.done.wait [#allocation3], 4096  }
  0x24   :  { %1114 = vsyncadd [#allocation3], 4294963200 }
  0x25   :  { %1115 = dma.done.wait [#allocation5], 4096  }
  0x26   :  { %1116 = vsyncadd [#allocation5], 4294963200  ;;  %v1123_v0 = vmov 0   ;;  %v981_v1 = vld [vmem:[#allocation2 + $0x4] ss:$16 sps:$4 sm:$0xff]   ;;  %v1033_v39 = vld [vmem:[#allocation4 + $0x48] sm:$0xff]  }
  0x27   :  { %303 = vmatprep.mubr.bf16.mxu0 %v1123_v0  ;;  %344 = vmatprep.mubr.bf16.mxu1 %v1123_v0  ;;  %v983_v2 = vld [vmem:[#allocation2 + $0xc] ss:$16 sps:$4 sm:$0xff]   ;;  %v985_v3 = vld [vmem:[#allocation2] ss:$16 sps:$4 sm:$0xff]   ;;  %v986_v4 = vld [vmem:[#allocation2 + $0x8] ss:$16 sps:$4 sm:$0xff]  }
  0x28   :  { %271 = vmatprep.subr.bf16.mxu0 %v981_v1  ;;  %312 = vmatprep.subr.bf16.mxu1 %v983_v2  ;;  %v987_v5 = vld [vmem:[#allocation2 + $0x24] ss:$16 sps:$4 sm:$0xff]   ;;  %v989_v6 = vld [vmem:[#allocation2 + $0x2c] ss:$16 sps:$4 sm:$0xff]   ;;  %v991_v7 = vld [vmem:[#allocation2 + $0x20] ss:$16 sps:$4 sm:$0xff]  }
  0x29   :  { %272 = vmatpush1.bf16.msra.mxu0 %v985_v3  ;;  %313 = vmatpush1.bf16.msra.mxu1 %v986_v4  ;;  %v992_v8 = vld [vmem:[#allocation2 + $0x28] ss:$16 sps:$4 sm:$0xff]   ;;  %v993_v9 = vld [vmem:[#allocation2 + $0x44] ss:$16 sps:$4 sm:$0xff]   ;;  %v995_v10 = vld [vmem:[#allocation2 + $0x4c] ss:$16 sps:$4 sm:$0xff]   ;;  %v91_v4 = vlaneseq }
  0x2a   :  { %273 = vmatprep.subr.bf16.mxu0 %v987_v5  ;;  %314 = vmatprep.subr.bf16.mxu1 %v989_v6  ;;  %v997_v11 = vld [vmem:[#allocation2 + $0x40] ss:$16 sps:$4 sm:$0xff]   ;;  %v998_v12 = vld [vmem:[#allocation2 + $0x48] ss:$16 sps:$4 sm:$0xff]   ;;  %v999_v13 = vld [vmem:[#allocation2 + $0x64] ss:$16 sps:$4 sm:$0xff]  }
  0x2b   :  { %v1001_v14 = vld [vmem:[#allocation2 + $0x6c] ss:$16 sps:$4 sm:$0xff]   ;;  %v1003_v15 = vld [vmem:[#allocation2 + $0x60] ss:$16 sps:$4 sm:$0xff]   ;;  %v1004_v16 = vld [vmem:[#allocation2 + $0x68] ss:$16 sps:$4 sm:$0xff]  }
  0x2c   :  { %v1005_v17 = vld [vmem:[#allocation2 + $0x84] ss:$16 sps:$4 sm:$0xff]   ;;  %v1007_v18 = vld [vmem:[#allocation2 + $0x8c] ss:$16 sps:$4 sm:$0xff]   ;;  %v1009_v19 = vld [vmem:[#allocation2 + $0x80] ss:$16 sps:$4 sm:$0xff]  }
  0x2d   :  { %274 = vmatpush1.bf16.msra.mxu0 %v991_v7  ;;  %315 = vmatpush1.bf16.msra.mxu1 %v992_v8  ;;  %v1010_v20 = vld [vmem:[#allocation2 + $0x88] ss:$16 sps:$4 sm:$0xff]   ;;  %v1011_v21 = vld [vmem:[#allocation2 + $0xa4] ss:$16 sps:$4 sm:$0xff]   ;;  %v1013_v22 = vld [vmem:[#allocation2 + $0xac] ss:$16 sps:$4 sm:$0xff]  }
  0x2e   :  { %275 = vmatprep.subr.bf16.mxu0 %v993_v9  ;;  %316 = vmatprep.subr.bf16.mxu1 %v995_v10  ;;  %v1015_v23 = vld [vmem:[#allocation2 + $0xa0] ss:$16 sps:$4 sm:$0xff]   ;;  %v1016_v24 = vld [vmem:[#allocation2 + $0xa8] ss:$16 sps:$4 sm:$0xff]   ;;  %v1017_v25 = vld [vmem:[#allocation2 + $0xc4] ss:$16 sps:$4 sm:$0xff]  }
  0x2f   :  { %v1019_v26 = vld [vmem:[#allocation2 + $0xcc] ss:$16 sps:$4 sm:$0xff]   ;;  %v1021_v27 = vld [vmem:[#allocation2 + $0xc0] ss:$16 sps:$4 sm:$0xff]   ;;  %v1022_v28 = vld [vmem:[#allocation2 + $0xc8] ss:$16 sps:$4 sm:$0xff]  }
  0x30   :  { %v1023_v29 = vld [vmem:[#allocation2 + $0xe4] ss:$16 sps:$4 sm:$0xff]   ;;  %v1025_v30 = vld [vmem:[#allocation2 + $0xec] ss:$16 sps:$4 sm:$0xff]   ;;  %v1027_v31 = vld [vmem:[#allocation2 + $0xe0] ss:$16 sps:$4 sm:$0xff]  }
  0x31   :  { %276 = vmatpush1.bf16.msra.mxu0 %v997_v11  ;;  %317 = vmatpush1.bf16.msra.mxu1 %v998_v12  ;;  %v1028_v32 = vld [vmem:[#allocation2 + $0xe8] ss:$16 sps:$4 sm:$0xff]   ;;  %v55_v33 = vld [vmem:[%s1229_s0] sm:$0xff]  ;;  %v1037_v43 = vld [vmem:[#allocation4 + $0x50] sm:$0xff]   ;;  %v1124_v3 = vmov 0.0   ;;  %v92_v5 = vshrl.u32 %v91_v4, 7 }
  0x32   :  { %277 = vmatprep.subr.bf16.mxu0 %v999_v13  ;;  %318 = vmatprep.subr.bf16.mxu1 %v1001_v14  ;;  %v1029_v34 = vld [vmem:[#allocation4 + $0x40] sm:$0xff]   ;;  %v56_v37 = vpack.c.bf16 %v55_v33, %v55_v33  ;;  %v1034_v40 = vld [vmem:[#allocation4 + $0xc8] sm:$0xff]   ;;  %v1038_v44 = vld [vmem:[#allocation4 + $0xd0] sm:$0xff]   ;;  %vm1125_vm0 = vmmov 0   ;;  %vm817_vm1 = vcmask 15360  }
  0x33   :  { %v1030_v35 = vld [vmem:[#allocation4 + $0xc0] sm:$0xff]   ;;  %v1035_v41 = vld [vmem:[#allocation4 + $0x8] sm:$0xff]   ;;  %v1039_v45 = vld [vmem:[#allocation4 + $0x10] sm:$0xff]   ;;  %v93_v6 = vsub.s32 0, %v92_v5  ;;  %v101_v7 = vsub.s32 2, %v92_v5  ;;  %v97_v9 = vsub.s32 1, %v92_v5 }
  0x34   :  { %v1031_v36 = vld [vmem:[#allocation4] sm:$0xff]   ;;  %v1036_v42 = vld [vmem:[#allocation4 + $0x88] sm:$0xff]   ;;  %v1040_v46 = vld [vmem:[#allocation4 + $0x90] sm:$0xff]   ;;  %v105_v10 = vsub.s32 3, %v92_v5 }
  0x35   :  { %278 = vmatpush1.bf16.msra.mxu0 %v1003_v15  ;;  %319 = vmatpush1.bf16.msra.mxu1 %v1004_v16  ;;  %v1032_v38 = vld [vmem:[#allocation4 + $0x80] sm:$0xff]   ;;  %v1041_v47 = vld [vmem:[#allocation4 + $0x58] sm:$0xff]   ;;  %v1049_v55 = vld [vmem:[#allocation4 + $0x68] sm:$0xff]  }
  0x36   :  { %279 = vmatprep.subr.bf16.mxu0 %v1005_v17  ;;  %320 = vmatprep.subr.bf16.mxu1 %v1007_v18  ;;  %v1042_v48 = vld [vmem:[#allocation4 + $0xd8] sm:$0xff]   ;;  %v1045_v51 = vld [vmem:[#allocation4 + $0x60] sm:$0xff]   ;;  %v1050_v56 = vld [vmem:[#allocation4 + $0xe8] sm:$0xff]  }
  0x37   :  { %v1043_v49 = vld [vmem:[#allocation4 + $0x18] sm:$0xff]   ;;  %v1046_v52 = vld [vmem:[#allocation4 + $0xe0] sm:$0xff]   ;;  %v1051_v57 = vld [vmem:[#allocation4 + $0x28] sm:$0xff]  }
  0x38   :  { %v1044_v50 = vld [vmem:[#allocation4 + $0x98] sm:$0xff]   ;;  %v1047_v53 = vld [vmem:[#allocation4 + $0x20] sm:$0xff]   ;;  %v1052_v58 = vld [vmem:[#allocation4 + $0xa8] sm:$0xff]  }
  0x39   :  { %280 = vmatpush1.bf16.msra.mxu0 %v1009_v19  ;;  %321 = vmatpush1.bf16.msra.mxu1 %v1010_v20  ;;  %v1048_v54 = vld [vmem:[#allocation4 + $0xa0] sm:$0xff]   ;;  %v1053_v59 = vld [vmem:[#allocation4 + $0x70] sm:$0xff]   ;;  %v1057_v63 = vld [vmem:[#allocation4 + $0x78] sm:$0xff]  }
  0x3a   :  { %281 = vmatprep.subr.bf16.mxu0 %v1011_v21  ;;  %322 = vmatprep.subr.bf16.mxu1 %v1013_v22  ;;  %v1054_v60 = vld [vmem:[#allocation4 + $0xf0] sm:$0xff]   ;;  %v1058_v0 = vld [vmem:[#allocation4 + $0xf8] sm:$0xff]   ;;  %v89_v8 = vld [vmem:[%s1231_s2] sm:$0xf] }
  0x3b   :  { %v1055_v61 = vld [vmem:[#allocation4 + $0x30] sm:$0xff]   ;;  %v1059_v1 = vld [vmem:[#allocation4 + $0x38] sm:$0xff]   ;;  %v94_v11 = vrot.slane %v89_v8, %v93_v6  ;;  %v102_v12 = vrot.slane %v89_v8, %v101_v7  ;;  %v98_v13 = vrot.slane %v89_v8, %v97_v9  ;;  %v106_v14 = vrot.slane %v89_v8, %v105_v10 }
  0x3c   :  { %v1056_v62 = vld [vmem:[#allocation4 + $0xb0] sm:$0xff]   ;;  %v1060_v2 = vld [vmem:[#allocation4 + $0xb8] sm:$0xff]  }
  0x3d   :  { %282 = vmatpush1.bf16.msra.mxu0 %v1015_v23  ;;  %323 = vmatpush1.bf16.msra.mxu1 %v1016_v24 }
  0x3e   :  { %283 = vmatprep.subr.bf16.mxu0 %v1017_v25  ;;  %324 = vmatprep.subr.bf16.mxu1 %v1019_v26 }
  0x41   :  { %284 = vmatpush1.bf16.msra.mxu0 %v1021_v27  ;;  %325 = vmatpush1.bf16.msra.mxu1 %v1022_v28 }
  0x42   :  { %285 = vmatprep.subr.bf16.mxu0 %v1023_v29  ;;  %326 = vmatprep.subr.bf16.mxu1 %v1025_v30 }
  0x45   :  { %286 = vmatpush1.bf16.msra.mxu0 %v1027_v31  ;;  %327 = vmatpush1.bf16.msra.mxu1 %v1028_v32 }
  0x46   :  { %899 = vmatprep.subr.bf16.mxu0 %v1029_v34  ;;  %921 = vmatprep.subr.bf16.mxu1 %v1030_v35  ;;  %v1061_v34 = vld [vmem:[%s1234_s5] sm:$0xff]  }
  0x48   :  { %304 = vmatmul.mubr.bf16.vlgmr.msra.gmra.mrb[0].mxu0 %v56_v37  ;;  %345 = vmatmul.mubr.bf16.vlgmr.msra.gmra.mrb[0].mxu1 %v56_v37  ;;  %v1063_v37 = vld [vmem:[%s1234_s5 + $0x10] sm:$0xff]  }
  0x49   :  { %900 = vmatpush3.bf16.msra.mxu0 %v1031_v36  ;;  %922 = vmatpush3.bf16.msra.mxu1 %v1032_v38  ;;  %v1062_v36 = vld [vmem:[%s1234_s5 + $0x8] sm:$0xff]   ;;  %v1064_v38 = vld [vmem:[%s1234_s5 + $0x18] sm:$0xff]  }
  0x4a   :  { %901 = vmatprep.subr.bf16.mxu0 %v1033_v39  ;;  %923 = vmatprep.subr.bf16.mxu1 %v1034_v40  ;;  %v1065_v39 = vld [vmem:[%s1234_s5 + $0x20] sm:$0xff]   ;;  %v1066_v40 = vld [vmem:[%s1234_s5 + $0x28] sm:$0xff]  }
  0x4d   :  { %902 = vmatpush3.bf16.msra.mxu0 %v1035_v41  ;;  %924 = vmatpush3.bf16.msra.mxu1 %v1036_v42  ;;  %v1067_v41 = vld [vmem:[%s1234_s5 + $0x30] sm:$0xff]   ;;  %v1068_v42 = vld [vmem:[%s1234_s5 + $0x38] sm:$0xff]  }
  0x4e   :  { %903 = vmatprep.subr.bf16.mxu0 %v1037_v43  ;;  %925 = vmatprep.subr.bf16.mxu1 %v1038_v44 }
  0x51   :  { %904 = vmatpush3.bf16.msra.mxu0 %v1039_v45  ;;  %926 = vmatpush3.bf16.msra.mxu1 %v1040_v46  ;;  %v857_v45 = vld [vmem:[%s1233_s4] ss:$0 sm:$0xff] }
  0x52   :  { %905 = vmatprep.subr.bf16.mxu0 %v1041_v47  ;;  %927 = vmatprep.subr.bf16.mxu1 %v1042_v48 }
  0x55   :  { %906 = vmatpush3.bf16.msra.mxu0 %v1043_v49  ;;  %928 = vmatpush3.bf16.msra.mxu1 %v1044_v50 }
  0x56   :  { %907 = vmatprep.subr.bf16.mxu0 %v1045_v51  ;;  %929 = vmatprep.subr.bf16.mxu1 %v1046_v52 }
  0x59   :  { %908 = vmatpush3.bf16.msra.mxu0 %v1047_v53  ;;  %930 = vmatpush3.bf16.msra.mxu1 %v1048_v54 }
  0x5a   :  { %909 = vmatprep.subr.bf16.mxu0 %v1049_v55  ;;  %931 = vmatprep.subr.bf16.mxu1 %v1050_v56 }
  0x5d   :  { %910 = vmatpush3.bf16.msra.mxu0 %v1051_v57  ;;  %932 = vmatpush3.bf16.msra.mxu1 %v1052_v58  ;;  %v890_v58 = vld [vmem:[%s1235_s6] ss:$0 sm:$0xff] }
  0x5e   :  { %911 = vmatprep.subr.bf16.mxu0 %v1053_v59  ;;  %933 = vmatprep.subr.bf16.mxu1 %v1054_v60 }
  0x61   :  { %912 = vmatpush3.bf16.msra.mxu0 %v1055_v61  ;;  %934 = vmatpush3.bf16.msra.mxu1 %v1056_v62 }
  0x62   :  { %913 = vmatprep.subr.bf16.mxu0 %v1057_v63  ;;  %935 = vmatprep.subr.bf16.mxu1 %v1058_v0 }
  0x65   :  { %914 = vmatpush3.bf16.msra.mxu0 %v1059_v1  ;;  %936 = vmatpush3.bf16.msra.mxu1 %v1060_v2 }
  0x66   :  { %952 = vmatprep.subr.bf16.mxu0 %v1124_v3 }
 0x11b   :  { %v305_v15 = vpop.f32.mrb[0].mxu0  ;;  %v346_v16 = vpop.f32.mrb[0].mxu1 }
 0x11c   :  { %v306_v17 = vadd.f32 %v305_v15, %v94_v11  ;;  %v347_v18 = vadd.f32 %v346_v16, %v102_v12  ;;  %v307_v19 = vpop.f32.mrb[1].mxu0  ;;  %v348_v20 = vpop.f32.mrb[1].mxu1 }
 0x11d   :  { %v308_v21 = vadd.f32 %v307_v19, %v98_v13  ;;  %v349_v22 = vadd.f32 %v348_v20, %v106_v14  ;;  %v309_v23 = vpop.f32.mrb[2].mxu0  ;;  %v350_v24 = vpop.f32.mrb[2].mxu1 }
 0x11e   :  { %v353_v25 = vmax.f32 %v306_v17, 0.0  ;;  %v355_v26 = vmax.f32 %v347_v18, 0.0  ;;  %v310_v27 = vpop.f32.mrb[3].mxu0  ;;  %v351_v28 = vpop.f32.mrb[3].mxu1 }
 0x11f   :  { %v354_v29 = vmax.f32 %v308_v21, 0.0  ;;  %v356_v30 = vmax.f32 %v349_v22, 0.0 }
 0x120   :  { %v359_v31 = vpack.c.bf16 %v355_v26, %v355_v26  ;;  %v357_v35 = vpack.c.bf16 %v353_v25, %v353_v25 }
 0x121   :  { %v358_v32 = vpack.c.bf16 %v354_v29, %v354_v29  ;;  %v360_v33 = vpack.c.bf16 %v356_v30, %v356_v30 }
 0x123   :  { %656 = vmatprep.mubr.bf16.mxu0 %v358_v32  ;;  %696 = vmatprep.mubr.bf16.mxu1 %v360_v33 }
 0x124   :  { %657 = vmatmul.mubr.bf16.vlgmr.msra.gmra.mrb[4].mxu0 %v357_v35  ;;  %697 = vmatmul.mubr.bf16.vlgmr.msra.gmra.mrb[4].mxu1 %v359_v31 }
 0x125   :  { %953 = vmatpush3.bf16.msra.mxu0 %v1061_v34  ;;  %968 = vmatprep.mubr.msk.bf16.mxu0 %vm1125_vm0, %v1124_v3 }
 0x126   :  { %954 = vmatprep.subr.bf16.mxu0 %v1124_v3 }
 0x129   :  { %955 = vmatpush3.bf16.msra.mxu0 %v1062_v36 }
 0x12a   :  { %956 = vmatprep.subr.bf16.mxu0 %v1124_v3 }
 0x12d   :  { %957 = vmatpush3.bf16.msra.mxu0 %v1063_v37 }
 0x12e   :  { %958 = vmatprep.subr.bf16.mxu0 %v1124_v3 }
 0x131   :  { %959 = vmatpush3.bf16.msra.mxu0 %v1064_v38 }
 0x132   :  { %960 = vmatprep.subr.bf16.mxu0 %v1124_v3 }
 0x135   :  { %961 = vmatpush3.bf16.msra.mxu0 %v1065_v39 }
 0x136   :  { %962 = vmatprep.subr.bf16.mxu0 %v1124_v3 }
 0x139   :  { %963 = vmatpush3.bf16.msra.mxu0 %v1066_v40 }
 0x13a   :  { %964 = vmatprep.subr.bf16.mxu0 %v1124_v3 }
 0x13d   :  { %965 = vmatpush3.bf16.msra.mxu0 %v1067_v41 }
 0x13e   :  { %966 = vmatprep.subr.bf16.mxu0 %v1124_v3 }
 0x141   :  { %967 = vmatpush3.bf16.msra.mxu0 %v1068_v42 }
 0x1f7   :  { %v915_v43 = vpop.f32.mrb[4].mxu0  ;;  %v937_v44 = vpop.f32.mrb[4].mxu1 }
 0x1f8   :  { %v916_v46 = vpop.f32.mrb[5].mxu0  ;;  %v938_v47 = vpop.f32.mrb[5].mxu1 }
 0x1f9   :  { %v917_v48 = vadd.f32 %v916_v46, %v915_v43  ;;  %v939_v49 = vadd.f32 %v938_v47, %v937_v44  ;;  %v918_v50 = vpop.f32.mrb[6].mxu0  ;;  %v940_v51 = vpop.f32.mrb[6].mxu1 }
 0x1fa   :  { %v919_v52 = vpop.f32.mrb[7].mxu0  ;;  %v941_v53 = vpop.f32.mrb[7].mxu1 }
 0x1fb   :  { %v659_v54 = vadd.f32 %v917_v48, %v857_v45 }
 0x1fd   :  { %v699_v55 = vadd.f32 %v939_v49, %v659_v54 }
 0x1ff   :  { %v704_v56 = vmax.f32 %v699_v55, 0.0 }
 0x201   :  { %v705_v57 = vpack.c.bf16 %v704_v56, %v704_v56 }
 0x203   :  { %969 = vmatmul.mubr.bf16.vlgmr.msra.gmra.mrb[8].mxu0 %v705_v57 }
 0x2d6   :  { %v811_v59 = vpop.f32.mrb[8].mxu0 }
 0x2d7   :  { %v812_v60 = vadd.f32 %v890_v58, %v811_v59  ;;  %v970_v61 = vpop.f32.mrb[9].mxu0 }
 0x2d8   :  { %v814_v62 = vpop.f32.mrb[10].mxu0 }
 0x2d9   :  { %818 = vst.msk [vmem:[%s1236_s7] sm:$0xff] %vm817_vm1, %v812_v60  ;;  %v971_v63 = vpop.f32.mrb[11].mxu0 }
 0x2da   :  { %823 = vsyncpa [#allocation3], 1 }
 0x2db   :  { %824 = vsyncpa [#allocation5], 1 }

</bundles_post_ra>
